<compile_context>
chip_gen: v7x
topology: tpu7x:2x2x1
jax: 0.10.0
libtpu: 0.0.40
codegen_flags: <defaults>
</compile_context>

<pallas_src>
import functools

import jax
import jax.numpy as jnp
import numpy as np
from jax.experimental import pallas as pl
from jax.experimental.pallas import tpu as pltpu

_BN_EPS = 1e-5


def encoder_gsea_kernel(x_ref, w_ref, bgb_ref, avg_ref, head_ref, out_ref,
                        *, layer_dims, channels, z_dim, batch):
    """Whole Encoder_GSEA forward in a single launch (5 operands, 1 output).

    Activations stay batch-first and lane-dense: h is (B, C*F).  Each
    per-channel linear is one block-diagonal matmul; BatchNorm statistics are
    single-pass (sum and sum-of-squares sublane-concatenated into a (2, C*F)
    tile) and pooled/re-broadcast per channel with ONE block-averaging matmul;
    the fused fc21/fc22 head is a single matmul against precomputed one-hot
    constants encoding the literal `hidden4.reshape(-1, channels)`
    permutation.  No in-kernel reshape/transpose, no HBM temporaries.
    """
    C, B, Z = channels, batch, z_dim
    h = x_ref[...]                                     # (B, C*F0) f32

    row = 0
    for li, (cfin, cfout) in enumerate(layer_dims):    # unrolled at trace time
        # Per-channel linear for all channels at once: block-diagonal matmul.
        w = w_ref[row:row + cfin, :][:, 0:cfout]       # static slab slice
        row += cfin
        bgb = bgb_ref[li]                              # (3, CFmax)
        b = bgb[0:1, 0:cfout]
        g = bgb[1:2, 0:cfout]
        be = bgb[2:3, 0:cfout]
        y = jnp.dot(h, w, preferred_element_type=jnp.float32) + b

        # BatchNorm1d(channels), train mode, biased variance, single pass:
        # ONE fused (2, C*F) @ (C*F, C*F) matmul pools the sums per channel
        # and re-broadcasts the stats to every column (no reshape needed).
        s1 = jnp.sum(y, axis=0, keepdims=True)         # (1, cf)
        s2 = jnp.sum(y * y, axis=0, keepdims=True)     # (1, cf)
        s12 = jnp.concatenate([s1, s2], axis=0)        # (2, cf) sublane concat
        a = avg_ref[li][0:cfout, 0:cfout]
        stats = jnp.dot(s12, a, preferred_element_type=jnp.float32)
        mean = stats[0:1, :]
        ex2 = stats[1:2, :]
        var = jnp.maximum(ex2 - mean * mean, 0.0)      # clamp f32 cancellation
        scale = g * jax.lax.rsqrt(var + _BN_EPS)       # gamma folded in
        h = jnp.maximum((y - mean) * scale + be, 0.0)  # ReLU

    # h == hidden4 batch-first (B, C).  Fused fc21/fc22 head including the
    # literal torch `hidden4.reshape(-1, channels)` of channel-first (C, B, 1):
    #   h_col[c*B + b] = h[b, c]     (tile + one-hot column select + lane sum)
    #   zcat = A_cat @ (h_col * W_rows) + b_cat   (a single MXU matmul)
    CB = C * B
    Z2 = 2 * Z
    a_cat = head_ref[0:B, :][:, 0:CB]                        # (B, C*B) one-hot
    m_sel = head_ref[B:B + CB, :][:, 0:C]                    # (C*B, C) selector
    d_fl = head_ref[B + CB:B + 2 * CB, :][:, 0:Z2]           # (C*B, 2Z) W rows
    b_cat = head_ref[B + 2 * CB:B + 2 * CB + 1, :][:, 0:Z2]  # (1, 2Z)

    h_rep = jnp.concatenate([h] * C, axis=0)                 # (C*B, C)
    h_col = jnp.sum(h_rep * m_sel, axis=1, keepdims=True)    # (C*B, 1)
    zcat = jnp.dot(a_cat, h_col * d_fl,
                   preferred_element_type=jnp.float32) + b_cat   # (B, 2Z)

    # Single lane-contiguous output; exp on the z_scale half via column mask.
    col = jax.lax.broadcasted_iota(jnp.int32, (B, Z2), 1)
    out_ref[...] = jnp.where(col < Z, zcat, jnp.exp(zcat))


def _block_diag(w):
    """(C, Fin, Fout) per-channel weights -> (C*Fin, C*Fout) block-diagonal."""
    c, fin, fout = w.shape
    eye = jnp.eye(c, dtype=w.dtype)
    return (w[:, :, None, :] * eye[:, None, :, None]).reshape(c * fin, c * fout)


def encoder_gsea_forward(x, params):
    """x: (C, B, input_dim) float32 -> (z_loc, z_scale), each (B, z_dim)."""
    C, B, F0 = x.shape
    Z = params["w21_t"].shape[1]
    f32 = jnp.float32

    # Layout plumbing (outside the kernel): batch-first, lane-dense (B, C*F0).
    # TODO(synk): at production sizes accept x batch-first from the producer
    #   (or keep (C, B, F0) in HBM with memory_space=pl.ANY plus a channel
    #   grid) to avoid this extra HBM read+write of x before the kernel runs.
    x_bd = jnp.transpose(x, (1, 0, 2)).reshape(B, C * F0)

    fins = [params[f"w{i}"].shape[1] for i in (1, 2, 3, 4)]
    fouts = [params[f"w{i}"].shape[2] for i in (1, 2, 3, 4)]
    layer_dims = tuple((C * fi, C * fo) for fi, fo in zip(fins, fouts))
    cf_max = max(C * fo for fo in fouts)

    # ---- Operand packing (layout plumbing; build once outside hot path). ----
    # TODO(synk): do NOT materialize O(C^2) block-diagonal weights or the
    #   O(C*B^2) one-hot head at production channel/batch counts; switch to a
    #   channel+batch grid with per-channel (Fin, Fout) BlockSpecs sized
    #   against v7x's 64 MiB VMEM, dimension_semantics=("parallel", ...), and
    #   bf16 MXU operands / 256-wide K on v6e/v7x.
    # 1) Block-diagonal weight slab: rows stacked per layer, lanes zero-padded.
    w_rows = sum(C * fi for fi in fins)
    w_slab = jnp.zeros((w_rows, cf_max), f32)
    r = 0
    for i, fi, fo in zip((1, 2, 3, 4), fins, fouts):
        w_slab = w_slab.at[r:r + C * fi, 0:C * fo].set(
            _block_diag(params[f"w{i}"]))
        r += C * fi

    # 2) {bias, gamma-per-column, beta-per-column} slab: (4, 3, CFmax).
    bgb = jnp.zeros((4, 3, cf_max), f32)
    # 3) Block-averaging slab (4, CFmax, CFmax): pools per channel over
    #    batch x features and re-broadcasts, so the kernel never reshapes.
    avg = jnp.zeros((4, cf_max, cf_max), f32)
    for li, (i, fo) in enumerate(zip((1, 2, 3, 4), fouts)):
        cf = C * fo
        ones_row = jnp.ones((1, fo), f32)
        bgb = bgb.at[li, 0, 0:cf].set(params[f"b{i}"][:, 0, :].reshape(cf))
        bgb = bgb.at[li, 1, 0:cf].set(
            jnp.kron(params[f"bn{i}_gamma"].reshape(1, C), ones_row).reshape(cf))
        bgb = bgb.at[li, 2, 0:cf].set(
            jnp.kron(params[f"bn{i}_beta"].reshape(1, C), ones_row).reshape(cf))
        avg = avg.at[li, 0:cf, 0:cf].set(
            jnp.kron(jnp.eye(C, dtype=f32),
                     jnp.full((fo, fo), 1.0 / (B * fo), f32)))

    # 4) Head slab: fused fc21/fc22 + literal `hidden4.reshape(-1, channels)`.
    # TODO(synk): confirm LinearWithChannel's exact output layout / BatchNorm
    #   axis against the real svgsa source; these constants encode the literal
    #   reshape of the channel-first (C, B, 1) hidden4 (the only
    #   shape-consistent reading of the spec).
    w_cat = jnp.concatenate([params["w21_t"], params["w22_t"]], axis=1)  # (C,2Z)
    b_cat = jnp.concatenate([params["b21"], params["b22"]], axis=1)      # (1,2Z)
    k = np.arange(C * B)            # flat index of channel-first hidden4: c*B+b
    a_cat = np.zeros((B, C * B), np.float32)
    a_cat[k // C, k] = 1.0          # element (c,b) scatters to output row k//C
    m_sel = np.zeros((C * B, C), np.float32)
    m_sel[k, k // B] = 1.0          # selects column c = k//B out of tiled h
    d_flat = w_cat[jnp.asarray(k % C)]                  # (C*B, 2Z): W row/(c,b)
    head_w = max(C * B, C, 2 * Z)
    head = jnp.zeros((B + 2 * C * B + 1, head_w), f32)
    head = head.at[0:B, 0:C * B].set(jnp.asarray(a_cat))
    head = head.at[B:B + C * B, 0:C].set(jnp.asarray(m_sel))
    head = head.at[B + C * B:B + 2 * C * B, 0:2 * Z].set(d_flat)
    head = head.at[B + 2 * C * B:, 0:2 * Z].set(b_cat)

    kernel = functools.partial(encoder_gsea_kernel, layer_dims=layer_dims,
                               channels=C, z_dim=Z, batch=B)
    vmem = pl.BlockSpec(memory_space=pltpu.MemorySpace.VMEM)
    # Gridless single launch: the whole live set is a few hundred KB, far
    # under VMEM on v5e/v6e/v7x.  At production sizes add a batch grid axis
    # marked "parallel" (v7x has 2 TensorCores per chip).
    zcat = pl.pallas_call(
        kernel,
        out_shape=jax.ShapeDtypeStruct((B, 2 * Z), f32),
        in_specs=[vmem] * 5,
        out_specs=vmem,
    )(x_bd, w_slab, bgb, avg, head)
    return zcat[:, :Z], zcat[:, Z:]


def _reference_forward(x, params):
    """Pure-JAX reference with the same math (HIGHEST-precision matmuls)."""
    hp = jax.lax.Precision.HIGHEST
    h = x
    for i in (1, 2, 3, 4):
        y = jnp.einsum('cbi,cio->cbo', h, params[f"w{i}"],
                       precision=hp) + params[f"b{i}"]
        mean = jnp.mean(y, axis=(1, 2), keepdims=True)
        var = jnp.mean((y - mean) ** 2, axis=(1, 2), keepdims=True)
        y_hat = (y - mean) * jax.lax.rsqrt(var + _BN_EPS)
        h = jnp.maximum(params[f"bn{i}_gamma"] * y_hat + params[f"bn{i}_beta"],
                        0.0)
    h4_flat = jnp.reshape(h, (-1, x.shape[0]))        # literal torch reshape
    z_loc = jnp.dot(h4_flat, params["w21_t"], precision=hp) + params["b21"]
    z_scale = jnp.exp(jnp.dot(h4_flat, params["w22_t"], precision=hp)
                      + params["b22"])
    return z_loc, z_scale


def make_params(key, input_dim, hidden_dims_enc, channels, z_dim, mask):
    dims = [input_dim] + list(hidden_dims_enc) + [1]
    params = {}
    keys = jax.random.split(key, 12)
    for i in range(4):
        fan_in = dims[i]
        bound = 1.0 / np.sqrt(fan_in)
        w = jax.random.uniform(keys[2 * i], (channels, dims[i], dims[i + 1]),
                               jnp.float32, -bound, bound)
        if i == 0:
            # prune.custom_from_mask(..., mask=mask.unsqueeze(-1)): weight*mask
            w = w * mask[:, :, None]
        b = jax.random.uniform(keys[2 * i + 1], (channels, 1, dims[i + 1]),
                               jnp.float32, -bound, bound)
        params[f"w{i + 1}"] = w
        params[f"b{i + 1}"] = b
        # BatchNorm1d affine params (gamma/beta), per channel.
        # TODO(synk): only training-mode batch statistics are implemented; no
        #   running-stats / eval-mode path exists in this kernel.
        params[f"bn{i + 1}_gamma"] = 1.0 + 0.1 * jax.random.normal(
            jax.random.fold_in(keys[8], i), (channels, 1, 1), jnp.float32)
        params[f"bn{i + 1}_beta"] = 0.1 * jax.random.normal(
            jax.random.fold_in(keys[9], i), (channels, 1, 1), jnp.float32)
    bound = 1.0 / np.sqrt(channels)
    # nn.Linear(channels, z_dim): weight (Z, C) stored pre-transposed (C, Z).
    params["w21_t"] = jax.random.uniform(keys[10], (channels, z_dim),
                                         jnp.float32, -bound, bound)
    params["b21"] = jax.random.uniform(jax.random.fold_in(keys[10], 1),
                                       (1, z_dim), jnp.float32, -bound, bound)
    params["w22_t"] = jax.random.uniform(keys[11], (channels, z_dim),
                                         jnp.float32, -bound, bound)
    params["b22"] = jax.random.uniform(jax.random.fold_in(keys[11], 1),
                                       (1, z_dim), jnp.float32, -bound, bound)
    return params


if __name__ == "__main__":
    # Small shapes: genes=32, gene-set channels=4, batch=8, hidden=[16,16,8], z=4.
    input_dim, channels, batch, z_dim = 32, 4, 8, 4
    hidden_dims_enc = [16, 16, 8]

    root = jax.random.PRNGKey(0)
    k_mask, k_param, k_x = jax.random.split(root, 3)

    # Gene-set membership mask (channels, input_dim), deterministic.
    mask = (jax.random.uniform(k_mask, (channels, input_dim)) > 0.5
            ).astype(jnp.float32)
    params = make_params(k_param, input_dim, hidden_dims_enc, channels, z_dim,
                         mask)

    # Encoder input in the (channels, batch, input_dim) layout fed to fc1.
    x = jax.random.normal(k_x, (channels, batch, input_dim), jnp.float32)

    z_loc, z_scale = jax.jit(encoder_gsea_forward)(x, params)
    jax.block_until_ready((z_loc, z_scale))

    z_loc_ref, z_scale_ref = _reference_forward(x, params)
    np.testing.assert_allclose(np.asarray(z_loc), np.asarray(z_loc_ref),
                               rtol=2e-4, atol=2e-5)
    np.testing.assert_allclose(np.asarray(z_scale), np.asarray(z_scale_ref),
                               rtol=2e-4, atol=2e-5)
    assert z_loc.shape == (batch, z_dim) and z_scale.shape == (batch, z_dim)
    assert bool(jnp.all(z_scale > 0))

    print("KERNEL_OK")
</pallas_src>

<mosaic_0001>
module attributes {stable_mosaic.version = 11 : i64} {
  func.func @encoder_gsea_kernel(%arg0: memref<8x128xf32, #tpu.memory_space<vmem>>, %arg1: memref<288x64xf32, #tpu.memory_space<vmem>>, %arg2: memref<4x3x64xf32, #tpu.memory_space<vmem>>, %arg3: memref<4x64x64xf32, #tpu.memory_space<vmem>>, %arg4: memref<73x32xf32, #tpu.memory_space<vmem>>, %arg5: memref<8x8xf32, #tpu.memory_space<vmem>>) attributes {dimension_semantics = [], scalar_prefetch = 0 : i64, scratch_operands = 0 : i64, tpu.core_type = #tpu.core_type<tc>} {
    %c0 = arith.constant 0 : index
    %c0_0 = arith.constant 0 : index
    %0 = vector.load %arg0[%c0, %c0_0] : memref<8x128xf32, #tpu.memory_space<vmem>>, vector<8x128xf32>
    %c0_1 = arith.constant 0 : index
    %c0_2 = arith.constant 0 : index
    %1 = vector.load %arg1[%c0_1, %c0_2] : memref<288x64xf32, #tpu.memory_space<vmem>>, vector<128x64xf32>
    %c0_3 = arith.constant 0 : index
    %c0_4 = arith.constant 0 : index
    %c0_5 = arith.constant 0 : index
    %2 = vector.load %arg2[%c0_3, %c0_4, %c0_5] : memref<4x3x64xf32, #tpu.memory_space<vmem>>, vector<1x3x64xf32>
    %3 = vector.shape_cast %2 : vector<1x3x64xf32> to vector<3x64xf32>
    %4 = vector.extract_strided_slice %3 {offsets = [0, 0], sizes = [1, 64], strides = [1, 1]} : vector<3x64xf32> to vector<1x64xf32>
    %5 = vector.extract_strided_slice %3 {offsets = [1, 0], sizes = [1, 64], strides = [1, 1]} : vector<3x64xf32> to vector<1x64xf32>
    %6 = vector.extract_strided_slice %3 {offsets = [2, 0], sizes = [1, 64], strides = [1, 1]} : vector<3x64xf32> to vector<1x64xf32>
    %cst = arith.constant dense<0.000000e+00> : vector<8x64xf32>
    %7 = tpu.matmul %0, %1, %cst {dimension_numbers = #tpu.dot_dimension_numbers<[1], [0], [0], [1], [0, 0, 1, 1], [], []>} : vector<8x128xf32>, vector<128x64xf32>, vector<8x64xf32> -> vector<8x64xf32>
    %8 = vector.broadcast %4 : vector<1x64xf32> to vector<8x64xf32>
    %9 = arith.addf %7, %8 : vector<8x64xf32>
    %cst_6 = arith.constant dense<0.000000e+00> : vector<64xf32>
    %10 = vector.multi_reduction <add>, %9, %cst_6 [0] : vector<8x64xf32> to vector<64xf32>
    %11 = vector.shape_cast %10 : vector<64xf32> to vector<1x64xf32>
    %12 = arith.mulf %9, %9 : vector<8x64xf32>
    %cst_7 = arith.constant dense<0.000000e+00> : vector<64xf32>
    %13 = vector.multi_reduction <add>, %12, %cst_7 [0] : vector<8x64xf32> to vector<64xf32>
    %14 = vector.shape_cast %13 : vector<64xf32> to vector<1x64xf32>
    %15 = tpu.concatenate %11, %14 in 0 : vector<1x64xf32>, vector<1x64xf32> -> vector<2x64xf32>
    %c0_8 = arith.constant 0 : index
    %c0_9 = arith.constant 0 : index
    %c0_10 = arith.constant 0 : index
    %16 = vector.load %arg3[%c0_8, %c0_9, %c0_10] : memref<4x64x64xf32, #tpu.memory_space<vmem>>, vector<1x64x64xf32>
    %17 = vector.shape_cast %16 : vector<1x64x64xf32> to vector<64x64xf32>
    %cst_11 = arith.constant dense<0.000000e+00> : vector<2x64xf32>
    %18 = tpu.matmul %15, %17, %cst_11 {dimension_numbers = #tpu.dot_dimension_numbers<[1], [0], [0], [1], [0, 0, 1, 1], [], []>} : vector<2x64xf32>, vector<64x64xf32>, vector<2x64xf32> -> vector<2x64xf32>
    %19 = vector.extract_strided_slice %18 {offsets = [0, 0], sizes = [1, 64], strides = [1, 1]} : vector<2x64xf32> to vector<1x64xf32>
    %20 = vector.extract_strided_slice %18 {offsets = [1, 0], sizes = [1, 64], strides = [1, 1]} : vector<2x64xf32> to vector<1x64xf32>
    %21 = arith.mulf %19, %19 : vector<1x64xf32>
    %22 = arith.subf %20, %21 : vector<1x64xf32>
    %cst_12 = arith.constant 0.000000e+00 : f32
    %23 = vector.broadcast %cst_12 : f32 to vector<1x64xf32>
    %24 = arith.maximumf %22, %23 : vector<1x64xf32>
    %cst_13 = arith.constant 9.99999974E-6 : f32
    %25 = vector.broadcast %cst_13 : f32 to vector<1x64xf32>
    %26 = arith.addf %24, %25 : vector<1x64xf32>
    %27 = math.rsqrt %26 : vector<1x64xf32>
    %28 = arith.mulf %5, %27 : vector<1x64xf32>
    %29 = vector.broadcast %19 : vector<1x64xf32> to vector<8x64xf32>
    %30 = arith.subf %9, %29 : vector<8x64xf32>
    %31 = vector.broadcast %28 : vector<1x64xf32> to vector<8x64xf32>
    %32 = arith.mulf %30, %31 : vector<8x64xf32>
    %33 = vector.broadcast %6 : vector<1x64xf32> to vector<8x64xf32>
    %34 = arith.addf %32, %33 : vector<8x64xf32>
    %cst_14 = arith.constant 0.000000e+00 : f32
    %35 = vector.broadcast %cst_14 : f32 to vector<8x64xf32>
    %36 = arith.maximumf %34, %35 : vector<8x64xf32>
    %c128 = arith.constant 128 : index
    %c0_15 = arith.constant 0 : index
    %37 = vector.load %arg1[%c128, %c0_15] : memref<288x64xf32, #tpu.memory_space<vmem>>, vector<64x64xf32>
    %c1 = arith.constant 1 : index
    %c0_16 = arith.constant 0 : index
    %c0_17 = arith.constant 0 : index
    %38 = vector.load %arg2[%c1, %c0_16, %c0_17] : memref<4x3x64xf32, #tpu.memory_space<vmem>>, vector<1x3x64xf32>
    %39 = vector.shape_cast %38 : vector<1x3x64xf32> to vector<3x64xf32>
    %40 = vector.extract_strided_slice %39 {offsets = [0, 0], sizes = [1, 64], strides = [1, 1]} : vector<3x64xf32> to vector<1x64xf32>
    %41 = vector.extract_strided_slice %39 {offsets = [1, 0], sizes = [1, 64], strides = [1, 1]} : vector<3x64xf32> to vector<1x64xf32>
    %42 = vector.extract_strided_slice %39 {offsets = [2, 0], sizes = [1, 64], strides = [1, 1]} : vector<3x64xf32> to vector<1x64xf32>
    %cst_18 = arith.constant dense<0.000000e+00> : vector<8x64xf32>
    %43 = tpu.matmul %36, %37, %cst_18 {dimension_numbers = #tpu.dot_dimension_numbers<[1], [0], [0], [1], [0, 0, 1, 1], [], []>} : vector<8x64xf32>, vector<64x64xf32>, vector<8x64xf32> -> vector<8x64xf32>
    %44 = vector.broadcast %40 : vector<1x64xf32> to vector<8x64xf32>
    %45 = arith.addf %43, %44 : vector<8x64xf32>
    %cst_19 = arith.constant dense<0.000000e+00> : vector<64xf32>
    %46 = vector.multi_reduction <add>, %45, %cst_19 [0] : vector<8x64xf32> to vector<64xf32>
    %47 = vector.shape_cast %46 : vector<64xf32> to vector<1x64xf32>
    %48 = arith.mulf %45, %45 : vector<8x64xf32>
    %cst_20 = arith.constant dense<0.000000e+00> : vector<64xf32>
    %49 = vector.multi_reduction <add>, %48, %cst_20 [0] : vector<8x64xf32> to vector<64xf32>
    %50 = vector.shape_cast %49 : vector<64xf32> to vector<1x64xf32>
    %51 = tpu.concatenate %47, %50 in 0 : vector<1x64xf32>, vector<1x64xf32> -> vector<2x64xf32>
    %c1_21 = arith.constant 1 : index
    %c0_22 = arith.constant 0 : index
    %c0_23 = arith.constant 0 : index
    %52 = vector.load %arg3[%c1_21, %c0_22, %c0_23] : memref<4x64x64xf32, #tpu.memory_space<vmem>>, vector<1x64x64xf32>
    %53 = vector.shape_cast %52 : vector<1x64x64xf32> to vector<64x64xf32>
    %cst_24 = arith.constant dense<0.000000e+00> : vector<2x64xf32>
    %54 = tpu.matmul %51, %53, %cst_24 {dimension_numbers = #tpu.dot_dimension_numbers<[1], [0], [0], [1], [0, 0, 1, 1], [], []>} : vector<2x64xf32>, vector<64x64xf32>, vector<2x64xf32> -> vector<2x64xf32>
    %55 = vector.extract_strided_slice %54 {offsets = [0, 0], sizes = [1, 64], strides = [1, 1]} : vector<2x64xf32> to vector<1x64xf32>
    %56 = vector.extract_strided_slice %54 {offsets = [1, 0], sizes = [1, 64], strides = [1, 1]} : vector<2x64xf32> to vector<1x64xf32>
    %57 = arith.mulf %55, %55 : vector<1x64xf32>
    %58 = arith.subf %56, %57 : vector<1x64xf32>
    %cst_25 = arith.constant 0.000000e+00 : f32
    %59 = vector.broadcast %cst_25 : f32 to vector<1x64xf32>
    %60 = arith.maximumf %58, %59 : vector<1x64xf32>
    %cst_26 = arith.constant 9.99999974E-6 : f32
    %61 = vector.broadcast %cst_26 : f32 to vector<1x64xf32>
    %62 = arith.addf %60, %61 : vector<1x64xf32>
    %63 = math.rsqrt %62 : vector<1x64xf32>
    %64 = arith.mulf %41, %63 : vector<1x64xf32>
    %65 = vector.broadcast %55 : vector<1x64xf32> to vector<8x64xf32>
    %66 = arith.subf %45, %65 : vector<8x64xf32>
    %67 = vector.broadcast %64 : vector<1x64xf32> to vector<8x64xf32>
    %68 = arith.mulf %66, %67 : vector<8x64xf32>
    %69 = vector.broadcast %42 : vector<1x64xf32> to vector<8x64xf32>
    %70 = arith.addf %68, %69 : vector<8x64xf32>
    %cst_27 = arith.constant 0.000000e+00 : f32
    %71 = vector.broadcast %cst_27 : f32 to vector<8x64xf32>
    %72 = arith.maximumf %70, %71 : vector<8x64xf32>
    %c192 = arith.constant 192 : index
    %c0_28 = arith.constant 0 : index
    %73 = vector.load %arg1[%c192, %c0_28] : memref<288x64xf32, #tpu.memory_space<vmem>>, vector<64x64xf32>
    %74 = vector.extract_strided_slice %73 {offsets = [0, 0], sizes = [64, 32], strides = [1, 1]} : vector<64x64xf32> to vector<64x32xf32>
    %c2 = arith.constant 2 : index
    %c0_29 = arith.constant 0 : index
    %c0_30 = arith.constant 0 : index
    %75 = vector.load %arg2[%c2, %c0_29, %c0_30] : memref<4x3x64xf32, #tpu.memory_space<vmem>>, vector<1x3x64xf32>
    %76 = vector.shape_cast %75 : vector<1x3x64xf32> to vector<3x64xf32>
    %77 = vector.extract_strided_slice %76 {offsets = [0, 0], sizes = [1, 32], strides = [1, 1]} : vector<3x64xf32> to vector<1x32xf32>
    %78 = vector.extract_strided_slice %76 {offsets = [1, 0], sizes = [1, 32], strides = [1, 1]} : vector<3x64xf32> to vector<1x32xf32>
    %79 = vector.extract_strided_slice %76 {offsets = [2, 0], sizes = [1, 32], strides = [1, 1]} : vector<3x64xf32> to vector<1x32xf32>
    %cst_31 = arith.constant dense<0.000000e+00> : vector<8x32xf32>
    %80 = tpu.matmul %72, %74, %cst_31 {dimension_numbers = #tpu.dot_dimension_numbers<[1], [0], [0], [1], [0, 0, 1, 1], [], []>} : vector<8x64xf32>, vector<64x32xf32>, vector<8x32xf32> -> vector<8x32xf32>
    %81 = vector.broadcast %77 : vector<1x32xf32> to vector<8x32xf32>
    %82 = arith.addf %80, %81 : vector<8x32xf32>
    %cst_32 = arith.constant dense<0.000000e+00> : vector<32xf32>
    %83 = vector.multi_reduction <add>, %82, %cst_32 [0] : vector<8x32xf32> to vector<32xf32>
    %84 = vector.shape_cast %83 : vector<32xf32> to vector<1x32xf32>
    %85 = arith.mulf %82, %82 : vector<8x32xf32>
    %cst_33 = arith.constant dense<0.000000e+00> : vector<32xf32>
    %86 = vector.multi_reduction <add>, %85, %cst_33 [0] : vector<8x32xf32> to vector<32xf32>
    %87 = vector.shape_cast %86 : vector<32xf32> to vector<1x32xf32>
    %88 = tpu.concatenate %84, %87 in 0 : vector<1x32xf32>, vector<1x32xf32> -> vector<2x32xf32>
    %c2_34 = arith.constant 2 : index
    %c0_35 = arith.constant 0 : index
    %c0_36 = arith.constant 0 : index
    %89 = vector.load %arg3[%c2_34, %c0_35, %c0_36] : memref<4x64x64xf32, #tpu.memory_space<vmem>>, vector<1x64x64xf32>
    %90 = vector.shape_cast %89 : vector<1x64x64xf32> to vector<64x64xf32>
    %91 = vector.extract_strided_slice %90 {offsets = [0, 0], sizes = [32, 32], strides = [1, 1]} : vector<64x64xf32> to vector<32x32xf32>
    %cst_37 = arith.constant dense<0.000000e+00> : vector<2x32xf32>
    %92 = tpu.matmul %88, %91, %cst_37 {dimension_numbers = #tpu.dot_dimension_numbers<[1], [0], [0], [1], [0, 0, 1, 1], [], []>} : vector<2x32xf32>, vector<32x32xf32>, vector<2x32xf32> -> vector<2x32xf32>
    %93 = vector.extract_strided_slice %92 {offsets = [0, 0], sizes = [1, 32], strides = [1, 1]} : vector<2x32xf32> to vector<1x32xf32>
    %94 = vector.extract_strided_slice %92 {offsets = [1, 0], sizes = [1, 32], strides = [1, 1]} : vector<2x32xf32> to vector<1x32xf32>
    %95 = arith.mulf %93, %93 : vector<1x32xf32>
    %96 = arith.subf %94, %95 : vector<1x32xf32>
    %cst_38 = arith.constant 0.000000e+00 : f32
    %97 = vector.broadcast %cst_38 : f32 to vector<1x32xf32>
    %98 = arith.maximumf %96, %97 : vector<1x32xf32>
    %cst_39 = arith.constant 9.99999974E-6 : f32
    %99 = vector.broadcast %cst_39 : f32 to vector<1x32xf32>
    %100 = arith.addf %98, %99 : vector<1x32xf32>
    %101 = math.rsqrt %100 : vector<1x32xf32>
    %102 = arith.mulf %78, %101 : vector<1x32xf32>
    %103 = vector.broadcast %93 : vector<1x32xf32> to vector<8x32xf32>
    %104 = arith.subf %82, %103 : vector<8x32xf32>
    %105 = vector.broadcast %102 : vector<1x32xf32> to vector<8x32xf32>
    %106 = arith.mulf %104, %105 : vector<8x32xf32>
    %107 = vector.broadcast %79 : vector<1x32xf32> to vector<8x32xf32>
    %108 = arith.addf %106, %107 : vector<8x32xf32>
    %cst_40 = arith.constant 0.000000e+00 : f32
    %109 = vector.broadcast %cst_40 : f32 to vector<8x32xf32>
    %110 = arith.maximumf %108, %109 : vector<8x32xf32>
    %c256 = arith.constant 256 : index
    %c0_41 = arith.constant 0 : index
    %111 = vector.load %arg1[%c256, %c0_41] : memref<288x64xf32, #tpu.memory_space<vmem>>, vector<32x64xf32>
    %112 = vector.extract_strided_slice %111 {offsets = [0, 0], sizes = [32, 4], strides = [1, 1]} : vector<32x64xf32> to vector<32x4xf32>
    %c3 = arith.constant 3 : index
    %c0_42 = arith.constant 0 : index
    %c0_43 = arith.constant 0 : index
    %113 = vector.load %arg2[%c3, %c0_42, %c0_43] : memref<4x3x64xf32, #tpu.memory_space<vmem>>, vector<1x3x64xf32>
    %114 = vector.shape_cast %113 : vector<1x3x64xf32> to vector<3x64xf32>
    %115 = vector.extract_strided_slice %114 {offsets = [0, 0], sizes = [1, 4], strides = [1, 1]} : vector<3x64xf32> to vector<1x4xf32>
    %116 = vector.extract_strided_slice %114 {offsets = [1, 0], sizes = [1, 4], strides = [1, 1]} : vector<3x64xf32> to vector<1x4xf32>
    %117 = vector.extract_strided_slice %114 {offsets = [2, 0], sizes = [1, 4], strides = [1, 1]} : vector<3x64xf32> to vector<1x4xf32>
    %cst_44 = arith.constant dense<0.000000e+00> : vector<8x4xf32>
    %118 = tpu.matmul %110, %112, %cst_44 {dimension_numbers = #tpu.dot_dimension_numbers<[1], [0], [0], [1], [0, 0, 1, 1], [], []>} : vector<8x32xf32>, vector<32x4xf32>, vector<8x4xf32> -> vector<8x4xf32>
    %119 = vector.broadcast %115 : vector<1x4xf32> to vector<8x4xf32>
    %120 = arith.addf %118, %119 : vector<8x4xf32>
    %cst_45 = arith.constant dense<0.000000e+00> : vector<4xf32>
    %121 = vector.multi_reduction <add>, %120, %cst_45 [0] : vector<8x4xf32> to vector<4xf32>
    %122 = vector.shape_cast %121 : vector<4xf32> to vector<1x4xf32>
    %123 = arith.mulf %120, %120 : vector<8x4xf32>
    %cst_46 = arith.constant dense<0.000000e+00> : vector<4xf32>
    %124 = vector.multi_reduction <add>, %123, %cst_46 [0] : vector<8x4xf32> to vector<4xf32>
    %125 = vector.shape_cast %124 : vector<4xf32> to vector<1x4xf32>
    %126 = tpu.concatenate %122, %125 in 0 : vector<1x4xf32>, vector<1x4xf32> -> vector<2x4xf32>
    %c3_47 = arith.constant 3 : index
    %c0_48 = arith.constant 0 : index
    %c0_49 = arith.constant 0 : index
    %127 = vector.load %arg3[%c3_47, %c0_48, %c0_49] : memref<4x64x64xf32, #tpu.memory_space<vmem>>, vector<1x64x64xf32>
    %128 = vector.shape_cast %127 : vector<1x64x64xf32> to vector<64x64xf32>
    %129 = vector.extract_strided_slice %128 {offsets = [0, 0], sizes = [4, 4], strides = [1, 1]} : vector<64x64xf32> to vector<4x4xf32>
    %cst_50 = arith.constant dense<0.000000e+00> : vector<2x4xf32>
    %130 = tpu.matmul %126, %129, %cst_50 {dimension_numbers = #tpu.dot_dimension_numbers<[1], [0], [0], [1], [0, 0, 1, 1], [], []>} : vector<2x4xf32>, vector<4x4xf32>, vector<2x4xf32> -> vector<2x4xf32>
    %131 = vector.extract_strided_slice %130 {offsets = [0, 0], sizes = [1, 4], strides = [1, 1]} : vector<2x4xf32> to vector<1x4xf32>
    %132 = vector.extract_strided_slice %130 {offsets = [1, 0], sizes = [1, 4], strides = [1, 1]} : vector<2x4xf32> to vector<1x4xf32>
    %133 = arith.mulf %131, %131 : vector<1x4xf32>
    %134 = arith.subf %132, %133 : vector<1x4xf32>
    %cst_51 = arith.constant 0.000000e+00 : f32
    %135 = vector.broadcast %cst_51 : f32 to vector<1x4xf32>
    %136 = arith.maximumf %134, %135 : vector<1x4xf32>
    %cst_52 = arith.constant 9.99999974E-6 : f32
    %137 = vector.broadcast %cst_52 : f32 to vector<1x4xf32>
    %138 = arith.addf %136, %137 : vector<1x4xf32>
    %139 = math.rsqrt %138 : vector<1x4xf32>
    %140 = arith.mulf %116, %139 : vector<1x4xf32>
    %141 = vector.broadcast %131 : vector<1x4xf32> to vector<8x4xf32>
    %142 = arith.subf %120, %141 : vector<8x4xf32>
    %143 = vector.broadcast %140 : vector<1x4xf32> to vector<8x4xf32>
    %144 = arith.mulf %142, %143 : vector<8x4xf32>
    %145 = vector.broadcast %117 : vector<1x4xf32> to vector<8x4xf32>
    %146 = arith.addf %144, %145 : vector<8x4xf32>
    %cst_53 = arith.constant 0.000000e+00 : f32
    %147 = vector.broadcast %cst_53 : f32 to vector<8x4xf32>
    %148 = arith.maximumf %146, %147 : vector<8x4xf32>
    %c0_54 = arith.constant 0 : index
    %c0_55 = arith.constant 0 : index
    %149 = vector.load %arg4[%c0_54, %c0_55] : memref<73x32xf32, #tpu.memory_space<vmem>>, vector<8x32xf32>
    %c8 = arith.constant 8 : index
    %c0_56 = arith.constant 0 : index
    %150 = vector.load %arg4[%c8, %c0_56] : memref<73x32xf32, #tpu.memory_space<vmem>>, vector<32x32xf32>
    %151 = vector.extract_strided_slice %150 {offsets = [0, 0], sizes = [32, 4], strides = [1, 1]} : vector<32x32xf32> to vector<32x4xf32>
    %c40 = arith.constant 40 : index
    %c0_57 = arith.constant 0 : index
    %152 = vector.load %arg4[%c40, %c0_57] : memref<73x32xf32, #tpu.memory_space<vmem>>, vector<32x32xf32>
    %153 = vector.extract_strided_slice %152 {offsets = [0, 0], sizes = [32, 8], strides = [1, 1]} : vector<32x32xf32> to vector<32x8xf32>
    %c72 = arith.constant 72 : index
    %c0_58 = arith.constant 0 : index
    %154 = vector.load %arg4[%c72, %c0_58] : memref<73x32xf32, #tpu.memory_space<vmem>>, vector<1x32xf32>
    %155 = vector.extract_strided_slice %154 {offsets = [0, 0], sizes = [1, 8], strides = [1, 1]} : vector<1x32xf32> to vector<1x8xf32>
    %156 = tpu.concatenate %148, %148, %148, %148 in 0 : vector<8x4xf32>, vector<8x4xf32>, vector<8x4xf32>, vector<8x4xf32> -> vector<32x4xf32>
    %157 = arith.mulf %156, %151 : vector<32x4xf32>
    %cst_59 = arith.constant dense<0.000000e+00> : vector<32xf32>
    %158 = vector.multi_reduction <add>, %157, %cst_59 [1] : vector<32x4xf32> to vector<32xf32>
    %159 = vector.shape_cast %158 : vector<32xf32> to vector<32x1xf32>
    %160 = vector.broadcast %159 : vector<32x1xf32> to vector<32x8xf32>
    %161 = arith.mulf %160, %153 : vector<32x8xf32>
    %cst_60 = arith.constant dense<0.000000e+00> : vector<8x8xf32>
    %162 = tpu.matmul %149, %161, %cst_60 {dimension_numbers = #tpu.dot_dimension_numbers<[1], [0], [0], [1], [0, 0, 1, 1], [], []>} : vector<8x32xf32>, vector<32x8xf32>, vector<8x8xf32> -> vector<8x8xf32>
    %163 = vector.broadcast %155 : vector<1x8xf32> to vector<8x8xf32>
    %164 = arith.addf %162, %163 : vector<8x8xf32>
    %165 = tpu.iota {dimensions = array<i32: 1>} : vector<8x8xi32>
    %c4_i32 = arith.constant 4 : i32
    %166 = vector.broadcast %c4_i32 : i32 to vector<8x8xi32>
    %167 = arith.cmpi slt, %165, %166 : vector<8x8xi32>
    %168 = math.exp %164 : vector<8x8xf32>
    %169 = arith.select %167, %164, %168 : vector<8x8xi1>, vector<8x8xf32>
    %c0_61 = arith.constant 0 : index
    %c0_62 = arith.constant 0 : index
    %170 = vector.load %arg5[%c0_61, %c0_62] : memref<8x8xf32, #tpu.memory_space<vmem>>, vector<8x8xf32>
    tpu.vector_store %arg5[%c0_61, %c0_62], %169 {strides = array<i32>} : memref<8x8xf32, #tpu.memory_space<vmem>>, vector<8x8xf32>,
    return
  }
}

</mosaic_0001>

<bundles_post_ra>
// kernel: encoder_gsea_forward.1
= control target key start
LH: loop header
LB: loop body
LE: loop exit
PB: predicated region body
PF: predicated region fallthrough
CT: control target
= control target key end

     0   :  { %v1324_v0 = vmov 0.0|0.0   ;;  %vm1325_vm0 = vmmov 0   ;;  %v1326_v4 = vmov 0.0   ;;  %v38_v39 = vlaneseq  ;;  %s1678_s1 = inlined_call_operand.vmem [shape: f32[288,64], index: 1, kind: input, shape index: {}]   ;;  %s1679_s0 = inlined_call_operand.vmem [shape: f32[8,128], index: 0, kind: input, shape index: {}]   ;;  %s1680_s3 = inlined_call_operand.vmem [shape: f32[4,64,64], index: 3, kind: input, shape index: {}]   ;;  %s1681_s2 = inlined_call_operand.vmem [shape: f32[4,3,64], index: 2, kind: input, shape index: {}]   ;;  %s1682_s4 = inlined_call_operand.vmem [shape: f32[73,32], index: 4, kind: input, shape index: {}]   ;;  %s1683_s5 = inlined_call_operand.vmem [shape: f32[8,8], index: 5, kind: output, shape index: {}]  }
   0x1   :  { %1221 = vmatprep.subr.bf16.mxu0 %v1324_v0  ;;  %v21_v1 = vld [vmem:[%s1678_s1] sm:$0xff]  ;;  %v22_v2 = vld [vmem:[%s1678_s1 + $0x8] sm:$0xff]  ;;  %v23_v3 = vld [vmem:[%s1678_s1 + $0x10] sm:$0xff]  ;;  %1104 = vmatprep.mubr.msk.f32.mxu0 %vm1325_vm0, %v1326_v4  ;;  %vm112_vm1 = vcmask 523264   ;;  %vm128_vm2 = vcmask 1040384   ;;  %vm533_vm3 = vcmask 261120  }
   0x2   :  { %v1222_v5 = vpack.c.bf16 %v22_v2, %v21_v1  ;;  %v24_v6 = vld [vmem:[%s1678_s1 + $0x18] sm:$0xff]  ;;  %1245 = vmatprep.subr.bf16.mxu1 %v1324_v0  ;;  %1123 = vmatprep.mubr.msk.f32.mxu1 %vm1325_vm0, %v1326_v4  ;;  %v25_v8 = vld [vmem:[%s1678_s1 + $0x20] sm:$0xff]  ;;  %v26_v9 = vld [vmem:[%s1678_s1 + $0x28] sm:$0xff]  ;;  %v39_v40 = vshrl.u32 %v38_v39, 7  ;;  %vm758_vm4 = vcmask 1043456   ;;  %vm736_vm5 = vcmask 31744  }
   0x3   :  { %v1225_v7 = vpack.c.bf16 %v24_v6, %v23_v3  ;;  %v1228_v10 = vpack.c.bf16 %v26_v9, %v25_v8  ;;  %v27_v11 = vld [vmem:[%s1678_s1 + $0x30] sm:$0xff]  ;;  %v28_v12 = vld [vmem:[%s1678_s1 + $0x38] sm:$0xff]  ;;  %v29_v14 = vld [vmem:[%s1678_s1 + $0x40] sm:$0xff]  ;;  %vm970_vm7 = vcmask 64512  }
   0x4   :  { %1223 = vmatpush3.bf16.msra.mxu0 %v1222_v5  ;;  %v1231_v13 = vpack.c.bf16 %v28_v12, %v27_v11  ;;  %v30_v15 = vld [vmem:[%s1678_s1 + $0x48] sm:$0xff]  ;;  %v31_v17 = vld [vmem:[%s1678_s1 + $0x50] sm:$0xff]  ;;  %v32_v18 = vld [vmem:[%s1678_s1 + $0x58] sm:$0xff]  ;;  %v1453_v41 = vsub.s32 0, %v39_v40 }
   0x5   :  { %1224 = vmatprep.subr.bf16.mxu0 %v1324_v0  ;;  %v1234_v16 = vpack.c.bf16 %v30_v15, %v29_v14  ;;  %v1237_v19 = vpack.c.bf16 %v32_v18, %v31_v17  ;;  %v33_v20 = vld [vmem:[%s1678_s1 + $0x60] sm:$0xff]  ;;  %v34_v21 = vld [vmem:[%s1678_s1 + $0x68] sm:$0xff]  ;;  %v35_v23 = vld [vmem:[%s1678_s1 + $0x70] sm:$0xff] }
   0x6   :  { %v1240_v22 = vpack.c.bf16 %v34_v21, %v33_v20  ;;  %v36_v24 = vld [vmem:[%s1678_s1 + $0x78] sm:$0xff]  ;;  %v20_v26 = vld [vmem:[%s1679_s0] sm:$0xff]  ;;  %v131_v28 = vld [vmem:[%s1680_s3 + $0x8] sm:$0xff]  ;;  %v1496_v20 = vsub.s32 2, %v39_v40 }
   0x7   :  { %v1243_v25 = vpack.c.bf16 %v36_v24, %v35_v23  ;;  %v130_v27 = vld [vmem:[%s1680_s3] sm:$0xff]  ;;  %v132_v30 = vld [vmem:[%s1680_s3 + $0x10] sm:$0xff]  ;;  %v133_v31 = vld [vmem:[%s1680_s3 + $0x18] sm:$0xff] }
   0x8   :  { %1226 = vmatpush3.bf16.msra.mxu0 %v1225_v7  ;;  %v1246_v29 = vpack.c.bf16 %v131_v28, %v130_v27  ;;  %v1249_v32 = vpack.c.bf16 %v133_v31, %v132_v30  ;;  %v134_v33 = vld [vmem:[%s1680_s3 + $0x20] sm:$0xff]  ;;  %v135_v34 = vld [vmem:[%s1680_s3 + $0x28] sm:$0xff]  ;;  %v136_v36 = vld [vmem:[%s1680_s3 + $0x30] sm:$0xff] }
   0x9   :  { %1227 = vmatprep.subr.bf16.mxu0 %v1324_v0  ;;  %v1252_v35 = vpack.c.bf16 %v135_v34, %v134_v33  ;;  %v137_v37 = vld [vmem:[%s1680_s3 + $0x38] sm:$0xff]  ;;  %v1458_v42 = vld [vmem:[%s1681_s2] sm:$0x7]  ;;  %v237_v1 = vld [vmem:[%s1678_s1 + $0x88] sm:$0xff] }
   0xa   :  { %1247 = vmatpush3.bf16.msra.mxu1 %v1246_v29  ;;  %v1255_v38 = vpack.c.bf16 %v137_v37, %v136_v36  ;;  %v41_v43 = vrot.slane %v1458_v42, %v1453_v41  ;;  %v236_v63 = vld [vmem:[%s1678_s1 + $0x80] sm:$0xff]  ;;  %v238_v3 = vld [vmem:[%s1678_s1 + $0x90] sm:$0xff]  ;;  %v239_v5 = vld [vmem:[%s1678_s1 + $0x98] sm:$0xff] }
   0xb   :  { %1248 = vmatprep.subr.bf16.mxu1 %v1324_v0  ;;  %v1258_v2 = vpack.c.bf16 %v237_v1, %v236_v63  ;;  %v1261_v6 = vpack.c.bf16 %v239_v5, %v238_v3  ;;  %v240_v7 = vld [vmem:[%s1678_s1 + $0xa0] sm:$0xff]  ;;  %v241_v8 = vld [vmem:[%s1678_s1 + $0xa8] sm:$0xff]  ;;  %v243_v11 = vld [vmem:[%s1678_s1 + $0xb8] sm:$0xff] }
   0xc   :  { %1229 = vmatpush3.bf16.msra.mxu0 %v1228_v10  ;;  %v1264_v9 = vpack.c.bf16 %v241_v8, %v240_v7  ;;  %v242_v10 = vld [vmem:[%s1678_s1 + $0xb0] sm:$0xff]  ;;  %v979_v31 = vld [vmem:[%s1680_s3 + $0x40] sm:$0xff]  ;;  %v447_v5 = vld [vmem:[%s1678_s1 + $0xc8] sm:$0xff] }
   0xd   :  { %1230 = vmatprep.subr.bf16.mxu0 %v1324_v0  ;;  %v1267_v12 = vpack.c.bf16 %v243_v11, %v242_v10  ;;  %v981_v34 = vld [vmem:[%s1680_s3 + $0x50] sm:$0xff]  ;;  %v983_v37 = vld [vmem:[%s1680_s3 + $0x60] sm:$0xff]  ;;  %v449_v8 = vld [vmem:[%s1678_s1 + $0xd8] sm:$0xff] }
   0xe   :  { %1250 = vmatpush3.bf16.msra.mxu1 %v1249_v32  ;;  %v980_v32 = vld [vmem:[%s1680_s3 + $0x48] sm:$0xff]  ;;  %v446_v3 = vld [vmem:[%s1678_s1 + $0xc0] sm:$0xff]  ;;  %v448_v7 = vld [vmem:[%s1678_s1 + $0xd0] sm:$0xff] }
   0xf   :  { %1251 = vmatprep.subr.bf16.mxu1 %v1324_v0  ;;  %v1270_v33 = vpack.c.bf16 %v980_v32, %v979_v31  ;;  %v450_v10 = vld [vmem:[%s1678_s1 + $0xe0] sm:$0xff]  ;;  %v451_v11 = vld [vmem:[%s1678_s1 + $0xe8] sm:$0xff] }
  0x10   :  { %1232 = vmatpush3.bf16.msra.mxu0 %v1231_v13 }
  0x11   :  { %1233 = vmatprep.subr.bf16.mxu0 %v1324_v0 }
  0x12   :  { %1253 = vmatpush3.bf16.msra.mxu1 %v1252_v35  ;;  %v982_v35 = vld [vmem:[%s1680_s3 + $0x58] sm:$0xff] }
  0x13   :  { %1254 = vmatprep.subr.bf16.mxu1 %v1324_v0  ;;  %v1273_v36 = vpack.c.bf16 %v982_v35, %v981_v34  ;;  %v990_v34 = vld [vmem:[%s1680_s3 + $0x80] sm:$0xff]  ;;  %v991_v35 = vld [vmem:[%s1680_s3 + $0x88] sm:$0xff] }
  0x14   :  { %1235 = vmatpush3.bf16.msra.mxu0 %v1234_v16 }
  0x15   :  { %1236 = vmatprep.subr.bf16.mxu0 %v1324_v0 }
  0x16   :  { %1256 = vmatpush3.bf16.msra.mxu1 %v1255_v38  ;;  %v984_v38 = vld [vmem:[%s1680_s3 + $0x68] sm:$0xff] }
  0x17   :  { %1257 = vmatprep.subr.bf16.mxu1 %v1324_v0 }
  0x18   :  { %1238 = vmatpush3.bf16.msra.mxu0 %v1237_v19 }
  0x19   :  { %1239 = vmatprep.subr.bf16.mxu0 %v1324_v0 }
  0x1c   :  { %1241 = vmatpush3.bf16.msra.mxu0 %v1240_v22  ;;  %v1499_v22 = vsub.s32 1, %v39_v40  ;;  %v1276_v40 = vpack.c.bf16 %v984_v38, %v983_v37  ;;  %v992_v37 = vld [vmem:[%s1680_s3 + $0x90] sm:$0xff]  ;;  %v993_v38 = vld [vmem:[%s1680_s3 + $0x98] sm:$0xff] }
  0x1d   :  { %1242 = vmatprep.subr.bf16.mxu0 %v1324_v0 }
  0x20   :  { %1244 = vmatpush3.bf16.msra.mxu0 %v1243_v25  ;;  %v233_v25 = vrot.slane %v1458_v42, %v1496_v20 }
  0x21   :  { %1269 = vmatprep.subr.bf16.mxu0 %v1324_v0 }
  0x23   :  { %1105 = vmatmul.mubr.f32.vlgmr.msra.gmra.mrb[0].mxu0 %v20_v26 }
  0x24   :  { %1161 = vmatprep.mubr.msk.f32.mxu0 %vm1325_vm0, %v1326_v4  ;;  %1271 = vmatpush3.bf16.msra.mxu0 %v1270_v33 }
  0x25   :  { %1272 = vmatprep.subr.bf16.mxu0 %v1324_v0 }
  0x28   :  { %1274 = vmatpush3.bf16.msra.mxu0 %v1273_v36  ;;  %v1294_v36 = vpack.c.bf16 %v991_v35, %v990_v34 }
  0x29   :  { %1275 = vmatprep.subr.bf16.mxu0 %v1324_v0 }
  0x2c   :  { %1277 = vmatpush3.bf16.msra.mxu0 %v1276_v40  ;;  %v1297_v40 = vpack.c.bf16 %v993_v38, %v992_v37 }
  0x2d   :  { %1278 = vmatprep.subr.bf16.mxu0 %v1324_v0 }
  0xf6   :  { %v108_v44 = vpop.f32.mrb[0].mxu0 }
  0xf7   :  { %v109_v45 = vadd.f32 %v108_v44, %v41_v43  ;;  %v1106_v46 = vpop.f32.mrb[1].mxu0  ;;  %v986_v43 = vld [vmem:[%s1680_s3 + $0x78] sm:$0xff] }
  0xf9   :  { %v113_v47 = vsel %vm112_vm1, %v109_v45, 0.0  ;;  %v120_v48 = vmul.f32 %v109_v45, %v109_v45 }
  0xfa   :  { %v114_v49 = vrot.slane %v113_v47, 4 }
  0xfb   :  { %v121_v50 = vsel %vm112_vm1, %v120_v48, 0.0 }
  0xfc   :  { %v115_v51 = vadd.f32 %v114_v49, %v113_v47  ;;  %v122_v52 = vrot.slane %v121_v50, 4 }
  0xfe   :  { %v116_v53 = vrot.slane %v115_v51, 2  ;;  %v123_v54 = vadd.f32 %v122_v52, %v121_v50 }
 0x100   :  { %v117_v55 = vadd.f32 %v116_v53, %v115_v51  ;;  %v124_v56 = vrot.slane %v123_v54, 2 }
 0x102   :  { %v118_v57 = vrot.slane %v117_v55, 1  ;;  %v125_v58 = vadd.f32 %v124_v56, %v123_v54 }
 0x104   :  { %v126_v59 = vrot.slane %v125_v58, 1  ;;  %v119_v60 = vadd.f32 %v118_v57, %v117_v55 }
 0x106   :  { %v127_v61 = vadd.f32 %v126_v59, %v125_v58 }
 0x108   :  { %v129_v62 = vsel %vm128_vm2, %v119_v60, %v127_v61 }
 0x109   :  { %1124 = vmatmul.mubr.msk.f32.vlgmr.msra.gmra.mrb[0].mxu1 %vm112_vm1, %v129_v62 }
 0x10a   :  { %1142 = vmatprep.mubr.msk.f32.mxu1 %vm1325_vm0, %v1326_v4  ;;  %1259 = vmatpush3.bf16.msra.mxu1 %v1258_v2 }
 0x10b   :  { %1260 = vmatprep.subr.bf16.mxu1 %v1324_v0 }
 0x10e   :  { %1262 = vmatpush3.bf16.msra.mxu1 %v1261_v6  ;;  %v1282_v6 = vpack.c.bf16 %v447_v5, %v446_v3  ;;  %v655_v3 = vld [vmem:[%s1678_s1 + $0x110] sm:$0xff]  ;;  %v656_v5 = vld [vmem:[%s1678_s1 + $0x118] sm:$0xff] }
 0x10f   :  { %1263 = vmatprep.subr.bf16.mxu1 %v1324_v0 }
 0x112   :  { %1265 = vmatpush3.bf16.msra.mxu1 %v1264_v9  ;;  %v1285_v9 = vpack.c.bf16 %v449_v8, %v448_v7 }
 0x113   :  { %1266 = vmatprep.subr.bf16.mxu1 %v1324_v0 }
 0x116   :  { %1268 = vmatpush3.bf16.msra.mxu1 %v1267_v12  ;;  %v1288_v12 = vpack.c.bf16 %v451_v11, %v450_v10 }
 0x117   :  { %1281 = vmatprep.subr.bf16.mxu1 %v1324_v0 }
 0x1dc   :  { %v207_v13 = vpop.f32.mrb[0].mxu1 }
 0x1dd   :  { %v211_v14 = vmul.f32 %v207_v13, %v207_v13  ;;  %v1125_v15 = vpop.f32.mrb[1].mxu1  ;;  %v223_v21 = vrot.slane %v207_v13, %v1453_v41 }
 0x1df   :  { %v213_v16 = vrot.slane %v211_v14, 7  ;;  %v224_v26 = vsub.f32 %v109_v45, %v223_v21  ;;  %v977_v45 = vld [vmem:[%s1681_s2 + $0x4] sm:$0x7]  ;;  %v453_v14 = vld [vmem:[%s1678_s1 + $0xf8] sm:$0xff] }
 0x1e0   :  { %v249_v46 = vrot.slane %v977_v45, %v1453_v41 }
 0x1e1   :  { %v215_v17 = vsub.f32 %v207_v13, %v213_v16  ;;  %v452_v13 = vld [vmem:[%s1678_s1 + $0xf0] sm:$0xff] }
 0x1e2   :  { %v1291_v15 = vpack.c.bf16 %v453_v14, %v452_v13 }
 0x1e3   :  { %v216_v18 = vmax.f32 %v215_v17, 0.0 }
 0x1e5   :  { %v217_v19 = vadd.f32 1e-05, %v216_v18 }
 0x1e7   :  { %1314 = vrsqrt.f32 %v217_v19 }
 0x1f1   :  { %v1315_v23 = vpop.eup %1314 }
 0x1f2   :  { %v219_v24 = vmul.f32 %v1315_v23, %v1458_v42  ;;  %v985_v42 = vld [vmem:[%s1680_s3 + $0x70] sm:$0xff] }
 0x1f3   :  { %v1279_v44 = vpack.c.bf16 %v986_v43, %v985_v42  ;;  %v988_v42 = vld [vmem:[%s1681_s2 + $0x8] sm:$0x7] }
 0x1f4   :  { %v228_v27 = vrot.slane %v219_v24, %v1499_v22  ;;  %v459_v43 = vrot.slane %v988_v42, %v1453_v41 }
 0x1f5   :  { %1280 = vmatpush3.bf16.msra.mxu0 %v1279_v44 }
 0x1f6   :  { %v229_v28 = vmul.f32 %v228_v27, %v224_v26  ;;  %1293 = vmatprep.subr.bf16.mxu0 %v1324_v0 }
 0x1f8   :  { %v234_v29 = vadd.f32 %v233_v25, %v229_v28  ;;  %v443_v28 = vrot.slane %v977_v45, %v1496_v20 }
 0x1fa   :  { %v235_v30 = vmax.f32 %v234_v29, 0.0 }
 0x1fc   :  { %1143 = vmatmul.mubr.msk.f32.vlgmr.msra.gmra.mrb[2].mxu1 %vm112_vm1, %v235_v30 }
 0x1fd   :  { %1180 = vmatprep.mubr.msk.f32.mxu1 %vm1325_vm0, %v1326_v4  ;;  %1283 = vmatpush3.bf16.msra.mxu1 %v1282_v6  ;;  %v1303_v6 = vpack.c.bf16 %v656_v5, %v655_v3 }
 0x1fe   :  { %1284 = vmatprep.subr.bf16.mxu1 %v1324_v0 }
 0x201   :  { %1286 = vmatpush3.bf16.msra.mxu1 %v1285_v9 }
 0x202   :  { %1287 = vmatprep.subr.bf16.mxu1 %v1324_v0 }
 0x205   :  { %1289 = vmatpush3.bf16.msra.mxu1 %v1288_v12 }
 0x206   :  { %1290 = vmatprep.subr.bf16.mxu1 %v1324_v0 }
 0x209   :  { %1292 = vmatpush3.bf16.msra.mxu1 %v1291_v15 }
 0x20a   :  { %1299 = vmatprep.subr.bf16.mxu1 %v1324_v0 }
 0x2cf   :  { %v319_v47 = vpop.f32.mrb[2].mxu1 }
 0x2d0   :  { %v320_v48 = vadd.f32 %v319_v47, %v249_v46  ;;  %v1144_v49 = vpop.f32.mrb[3].mxu1 }
 0x2d2   :  { %v323_v50 = vsel %vm112_vm1, %v320_v48, 0.0  ;;  %v330_v51 = vmul.f32 %v320_v48, %v320_v48 }
 0x2d3   :  { %v324_v52 = vrot.slane %v323_v50, 4 }
 0x2d4   :  { %v331_v53 = vsel %vm112_vm1, %v330_v51, 0.0 }
 0x2d5   :  { %v325_v54 = vadd.f32 %v324_v52, %v323_v50  ;;  %v332_v55 = vrot.slane %v331_v53, 4 }
 0x2d7   :  { %v326_v56 = vrot.slane %v325_v54, 2  ;;  %v333_v57 = vadd.f32 %v332_v55, %v331_v53 }
 0x2d9   :  { %v327_v58 = vadd.f32 %v326_v56, %v325_v54  ;;  %v334_v59 = vrot.slane %v333_v57, 2 }
 0x2db   :  { %v328_v60 = vrot.slane %v327_v58, 1  ;;  %v335_v61 = vadd.f32 %v334_v59, %v333_v57 }
 0x2dd   :  { %v336_v62 = vrot.slane %v335_v61, 1  ;;  %v329_v63 = vadd.f32 %v328_v60, %v327_v58 }
 0x2df   :  { %v337_v1 = vadd.f32 %v336_v62, %v335_v61 }
 0x2e1   :  { %v338_v2 = vsel %vm128_vm2, %v329_v63, %v337_v1  ;;  %v653_v63 = vld [vmem:[%s1678_s1 + $0x100] sm:$0xff]  ;;  %v654_v1 = vld [vmem:[%s1678_s1 + $0x108] sm:$0xff] }
 0x2e2   :  { %1162 = vmatmul.mubr.msk.f32.vlgmr.msra.gmra.mrb[2].mxu0 %vm112_vm1, %v338_v2  ;;  %v1300_v2 = vpack.c.bf16 %v654_v1, %v653_v63  ;;  %v860_v63 = vld [vmem:[%s1682_s4 + $0x18] sm:$0xff]  ;;  %v858_v1 = vld [vmem:[%s1682_s4 + $0x8] sm:$0xff] }
 0x2e3   :  { %1191 = vmatprep.mubr.msk.f32.mxu0 %vm1325_vm0, %v1326_v4  ;;  %1295 = vmatpush3.bf16.msra.mxu0 %v1294_v36 }
 0x2e4   :  { %1296 = vmatprep.subr.bf16.mxu0 %v1324_v0 }
 0x2e7   :  { %1298 = vmatpush3.bf16.msra.mxu0 %v1297_v40 }
 0x2e8   :  { %1205 = vmatprep.subr.mxu0 %v1326_v4 }
 0x3b5   :  { %v417_v16 = vpop.f32.mrb[2].mxu0 }
 0x3b6   :  { %v421_v17 = vmul.f32 %v417_v16, %v417_v16  ;;  %v1163_v18 = vpop.f32.mrb[3].mxu0  ;;  %v433_v25 = vrot.slane %v417_v16, %v1453_v41 }
 0x3b8   :  { %v423_v19 = vrot.slane %v421_v17, 7  ;;  %v434_v29 = vsub.f32 %v320_v48, %v433_v25  ;;  %v650_v17 = vrot.slane %v988_v42, %v1496_v20  ;;  %v997_v25 = vld [vmem:[%s1680_s3 + $0xc0] sm:$0xff] }
 0x3ba   :  { %v425_v21 = vsub.f32 %v417_v16, %v423_v19 }
 0x3bc   :  { %v426_v23 = vmax.f32 %v425_v21, 0.0 }
 0x3be   :  { %v427_v24 = vadd.f32 1e-05, %v426_v23 }
 0x3c0   :  { %1316 = vrsqrt.f32 %v427_v24 }
 0x3ca   :  { %v1317_v26 = vpop.eup %1316 }
 0x3cb   :  { %v429_v27 = vmul.f32 %v1317_v26, %v977_v45  ;;  %v995_v26 = vld [vmem:[%s1681_s2 + $0xc] sm:$0x7] }
 0x3cd   :  { %v438_v30 = vrot.slane %v429_v27, %v1499_v22  ;;  %v662_v27 = vrot.slane %v995_v26, %v1453_v41 }
 0x3cf   :  { %v439_v31 = vmul.f32 %v438_v30, %v434_v29 }
 0x3d1   :  { %v444_v32 = vadd.f32 %v443_v28, %v439_v31 }
 0x3d3   :  { %v445_v33 = vmax.f32 %v444_v32, 0.0 }
 0x3d5   :  { %1181 = vmatmul.mubr.msk.f32.vlgmr.msra.gmra.mrb[4].mxu1 %vm112_vm1, %v445_v33 }
 0x3d6   :  { %1202 = vmatprep.mubr.msk.f32.mxu1 %vm1325_vm0, %v1326_v4  ;;  %1301 = vmatpush3.bf16.msra.mxu1 %v1300_v2 }
 0x3d7   :  { %1302 = vmatprep.subr.bf16.mxu1 %v1324_v0 }
 0x3da   :  { %1304 = vmatpush3.bf16.msra.mxu1 %v1303_v6 }
 0x3db   :  { %1305 = vmatprep.subr.bf16.mxu1 %v1324_v0 }
 0x4a8   :  { %v529_v44 = vpop.f32.mrb[4].mxu1 }
 0x4a9   :  { %v530_v45 = vadd.f32 %v529_v44, %v459_v43  ;;  %v1182_v46 = vpop.f32.mrb[5].mxu1 }
 0x4ab   :  { %v534_v47 = vsel %vm533_vm3, %v530_v45, 0.0  ;;  %v541_v48 = vmul.f32 %v530_v45, %v530_v45 }
 0x4ac   :  { %v535_v49 = vrot.slane %v534_v47, 4 }
 0x4ad   :  { %v542_v50 = vsel %vm533_vm3, %v541_v48, 0.0 }
 0x4ae   :  { %v536_v51 = vadd.f32 %v535_v49, %v534_v47  ;;  %v543_v52 = vrot.slane %v542_v50, 4 }
 0x4b0   :  { %v537_v53 = vrot.slane %v536_v51, 2  ;;  %v544_v54 = vadd.f32 %v543_v52, %v542_v50 }
 0x4b2   :  { %v538_v55 = vadd.f32 %v537_v53, %v536_v51  ;;  %v545_v56 = vrot.slane %v544_v54, 2 }
 0x4b4   :  { %v539_v57 = vrot.slane %v538_v55, 1  ;;  %v546_v58 = vadd.f32 %v545_v56, %v544_v54 }
 0x4b6   :  { %v547_v59 = vrot.slane %v546_v58, 1  ;;  %v540_v60 = vadd.f32 %v539_v57, %v538_v55 }
 0x4b8   :  { %v548_v61 = vadd.f32 %v547_v59, %v546_v58  ;;  %v854_v58 = vrot.slane %v995_v26, %v1496_v20  ;;  %v859_v20 = vld [vmem:[%s1682_s4 + $0x10] sm:$0xff] }
 0x4ba   :  { %v549_v62 = vsel %vm128_vm2, %v540_v60, %v548_v61 }
 0x4bb   :  { %1192 = vmatmul.mubr.msk.f32.vlgmr.msra.gmra.mrb[4].mxu0 %vm533_vm3, %v549_v62 }
 0x4bc   :  { %1207 = vmatprep.mubr.msk.f32.mxu0 %vm1325_vm0, %v1326_v4  ;;  %1206 = vmatpush3.msk.msra.mxu0 %vm758_vm4, %v997_v25 }
 0x58e   :  { %v624_v7 = vpop.f32.mrb[4].mxu0 }
 0x58f   :  { %v628_v8 = vmul.f32 %v624_v7, %v624_v7  ;;  %v1193_v9 = vpop.f32.mrb[5].mxu0  ;;  %v640_v14 = vrot.slane %v624_v7, %v1453_v41 }
 0x591   :  { %v630_v10 = vrot.slane %v628_v8, 7  ;;  %v641_v18 = vsub.f32 %v530_v45, %v640_v14  ;;  %v863_v14 = vld [vmem:[%s1682_s4 + $0x30] sm:$0xff] }
 0x593   :  { %v632_v11 = vsub.f32 %v624_v7, %v630_v10 }
 0x595   :  { %v633_v12 = vmax.f32 %v632_v11, 0.0 }
 0x597   :  { %v634_v13 = vadd.f32 1e-05, %v633_v12 }
 0x599   :  { %1318 = vrsqrt.f32 %v634_v13  ;;  %v862_v13 = vld [vmem:[%s1682_s4 + $0x28] sm:$0xff] }
 0x5a3   :  { %v1319_v15 = vpop.eup %1318 }
 0x5a4   :  { %v636_v16 = vmul.f32 %v1319_v15, %v988_v42  ;;  %v865_v15 = vld [vmem:[%s1682_s4 + $0x40] sm:$0xff] }
 0x5a6   :  { %v645_v19 = vrot.slane %v636_v16, %v1499_v22 }
 0x5a8   :  { %v646_v21 = vmul.f32 %v645_v19, %v641_v18 }
 0x5aa   :  { %v651_v23 = vadd.f32 %v650_v17, %v646_v21  ;;  %v864_v21 = vld [vmem:[%s1682_s4 + $0x38] sm:$0xff] }
 0x5ac   :  { %v652_v24 = vmax.f32 %v651_v23, 0.0 }
 0x5ae   :  { %1203 = vmatmul.mubr.msk.f32.vlgmr.msra.gmra.mrb[6].mxu1 %vm533_vm3, %v652_v24 }
 0x5af   :  { %1218 = vmatprep.mubr.msk.f32.mxu1 %vm1325_vm0, %v1326_v4 }
 0x681   :  { %v732_v28 = vpop.f32.mrb[6].mxu1 }
 0x682   :  { %v733_v29 = vadd.f32 %v732_v28, %v662_v27  ;;  %v1204_v30 = vpop.f32.mrb[7].mxu1  ;;  %v857_v27 = vld [vmem:[%s1682_s4] sm:$0xff]  ;;  %v1000_v28 = vld [vmem:[%s1682_s4 + $0x48] ss:$0 sm:$0xff] }
 0x684   :  { %v737_v31 = vsel %vm736_vm5, %v733_v29, 0.0  ;;  %v744_v32 = vmul.f32 %v733_v29, %v733_v29 }
 0x685   :  { %v738_v4 = vrot.slane %v737_v31, 4 }
 0x686   :  { %v745_v33 = vsel %vm736_vm5, %v744_v32, 0.0 }
 0x687   :  { %v739_v34 = vadd.f32 %v738_v4, %v737_v31  ;;  %v746_v35 = vrot.slane %v745_v33, 4  ;;  %v965_v4 = vand.u32 127, %v38_v39 }
 0x689   :  { %v740_v36 = vrot.slane %v739_v34, 2  ;;  %v747_v37 = vadd.f32 %v746_v35, %v745_v33  ;;  %vm966_vm6 = vcmp.lt.s32.totalorder %v965_v4, 4 }
 0x68b   :  { %v741_v38 = vadd.f32 %v740_v36, %v739_v34  ;;  %v748_v40 = vrot.slane %v747_v37, 2 }
 0x68d   :  { %v742_v42 = vrot.slane %v741_v38, 1  ;;  %v749_v43 = vadd.f32 %v748_v40, %v747_v37 }
 0x68f   :  { %v750_v44 = vrot.slane %v749_v43, 1  ;;  %v743_v45 = vadd.f32 %v742_v42, %v741_v38 }
 0x691   :  { %v751_v46 = vadd.f32 %v750_v44, %v749_v43 }
 0x693   :  { %v752_v47 = vsel %vm128_vm2, %v743_v45, %v751_v46 }
 0x694   :  { %1208 = vmatmul.mubr.msk.f32.vlgmr.msra.gmra.mrb[6].mxu0 %vm736_vm5, %v752_v47 }
 0x767   :  { %v828_v48 = vpop.f32.mrb[6].mxu0 }
 0x768   :  { %v832_v49 = vmul.f32 %v828_v48, %v828_v48  ;;  %v1209_v50 = vpop.f32.mrb[7].mxu0  ;;  %v844_v55 = vrot.slane %v828_v48, %v1453_v41  ;;  %v861_v41 = vld [vmem:[%s1682_s4 + $0x20] sm:$0xff] }
 0x76a   :  { %v834_v51 = vrot.slane %v832_v49, 7  ;;  %v845_v59 = vsub.f32 %v733_v29, %v844_v55 }
 0x76c   :  { %v836_v52 = vsub.f32 %v828_v48, %v834_v51 }
 0x76e   :  { %v837_v53 = vmax.f32 %v836_v52, 0.0 }
 0x770   :  { %v838_v54 = vadd.f32 1e-05, %v837_v53 }
 0x772   :  { %1320 = vrsqrt.f32 %v838_v54 }
 0x77c   :  { %v1321_v56 = vpop.eup %1320 }
 0x77d   :  { %v840_v57 = vmul.f32 %v1321_v56, %v995_v26 }
 0x77f   :  { %v849_v60 = vrot.slane %v840_v57, %v1499_v22 }
 0x781   :  { %v850_v61 = vmul.f32 %v849_v60, %v845_v59 }
 0x783   :  { %v855_v62 = vadd.f32 %v854_v58, %v850_v61 }
 0x785   :  { %v856_v2 = vmax.f32 %v855_v62, 0.0 }
 0x787   :  { %v869_v22 = vmul.f32 %v860_v63, %v856_v2  ;;  %v867_v3 = vmul.f32 %v858_v1, %v856_v2  ;;  %v870_v7 = vmul.f32 %v861_v41, %v856_v2  ;;  %v868_v8 = vmul.f32 %v859_v20, %v856_v2 }
 0x789   :  { %v877_v5 = vsel %vm736_vm5, %v869_v22, 0.0  ;;  %v871_v6 = vsel %vm736_vm5, %v867_v3, 0.0  ;;  %v880_v9 = vsel %vm736_vm5, %v870_v7, 0.0  ;;  %v874_v10 = vsel %vm736_vm5, %v868_v8, 0.0 }
 0x78a   :  { %878 = vadd.xlane.f32.xlu1 %v877_v5  ;;  %872 = vadd.xlane.f32.xlu0 %v871_v6 }
 0x78e   :  { %881 = vadd.xlane.f32.xlu1 %v880_v9  ;;  %875 = vadd.xlane.f32.xlu0 %v874_v10 }
 0x817   :  { %v879_v11 = vpop.xlane.xlu1 %878  ;;  %v873_v12 = vpop.xlane.xlu0 %872 }
 0x818   :  { %v883_v18 = vmul.f32 %v873_v12, %v862_v13  ;;  %v885_v25 = vmul.f32 %v879_v11, %v864_v21 }
 0x81b   :  { %v882_v16 = vpop.xlane.xlu1 %881  ;;  %v876_v17 = vpop.xlane.xlu0 %875 }
 0x81c   :  { %v884_v19 = vmul.f32 %v876_v17, %v863_v14  ;;  %v886_v23 = vmul.f32 %v882_v16, %v865_v15 }
 0x81e   :  { %v1306_v24 = vpack.c.bf16 %v884_v19, %v883_v18  ;;  %v1309_v26 = vpack.c.bf16 %v886_v23, %v885_v25 }
 0x820   :  { %1307 = vmatpush3.bf16.msra.mxu1 %v1306_v24 }
 0x821   :  { %1308 = vmatprep.subr.bf16.mxu1 %v1324_v0 }
 0x824   :  { %1310 = vmatpush3.bf16.msra.mxu1 %v1309_v26 }
 0x827   :  { %1219 = vmatmul.mubr.msk.f32.vlgmr.msra.gmra.mrb[8].mxu1 %vm533_vm3, %v857_v27 }
 0x8fa   :  { %v960_v29 = vpop.f32.mrb[8].mxu1 }
 0x8fb   :  { %v961_v30 = vadd.f32 %v1000_v28, %v960_v29  ;;  %v1220_v31 = vpop.f32.mrb[9].mxu1 }
 0x8fd   :  { %v967_v32 = vmul.f32 1.442695, %v961_v30 }
 0x8ff   :  { %1322 = vpow2.f32 %v967_v32 }
 0x909   :  { %v1323_v0 = vpop.eup %1322 }
 0x90a   :  { %v969_v33 = vsel %vm966_vm6, %v961_v30, %v1323_v0 }
 0x90b   :  { %971 = vst.msk [vmem:[%s1683_s5] sm:$0xff] %vm970_vm7, %v969_v33 }

</bundles_post_ra>
